<compile_context>
chip_gen: v7x
topology: tpu7x:2x2x1
jax: 0.10.0
libtpu: 0.0.40
codegen_flags: <defaults>
</compile_context>

<pallas_src>
import jax
import jax.numpy as jnp
from jax import lax
from jax.experimental import pallas as pl
from jax.experimental.pallas import tpu as pltpu

_TARGET_BLOCK_BYTES = 2 * 1024 * 1024    # per input, per pipeline buffer
_VMEM_LIMIT_BYTES = 48 * 1024 * 1024     # > v5e 16 MiB default, < v7x 64 MiB physical
_SUB = 8                                  # f32 sublane tile (accumulator height)


def _cdiv(a, b):
    return (a + b - 1) // b


def _round_up(x, m):
    return _cdiv(x, m) * m


def _num_tensorcores():
    """Best-effort TensorCore count (2 on v7x-style chips, else 1)."""
    try:
        info = pltpu.get_tpu_info()
        for name in ("num_cores", "core_count", "num_tensorcores",
                     "tensorcores_per_chip"):
            v = getattr(info, name, None)
            if isinstance(v, int) and v > 0:
                return v
    except Exception:
        pass
    return 1


def line_search_forward(inputs, assist_rate):
    """JAX/Pallas equivalent of LineSearch.forward (MSE, mean reduction)."""
    history = inputs["history"]
    output = inputs["output"]
    target = inputs["target"]
    assert history.shape == output.shape == target.shape
    total = history.size
    dtype = history.dtype
    itemsize = jnp.dtype(dtype).itemsize

    # --- lane-dense 2-D view without copying HBM ----------------------------
    lane_w = 128
    pad = 0
    for lw in (512, 256, 128):
        if total % lw == 0:
            lane_w = lw
            break
    else:
        # TODO(synk): rare 128-misaligned tail still needs one padded copy.
        pad = (-total) % 128
    rows = (total + pad) // lane_w           # rows of valid data (pads are 0)

    # --- tiling --------------------------------------------------------------
    strip = max(16, 32 // itemsize)          # packed-sublane-aligned strip height
    block_rows = max(strip,
                     (_TARGET_BLOCK_BYTES // (lane_w * itemsize)) // strip * strip)
    block_rows = min(block_rows, _round_up(rows, strip))
    blocks = _cdiv(rows, block_rows)

    n_cores = _num_tensorcores()
    n_outer = n_cores if (n_cores > 1 and blocks % n_cores == 0) else 1
    n_inner = blocks // n_outer

    needs_mask = (n_outer * n_inner * block_rows) > rows   # ragged tail block?
    n_strips = block_rows // strip

    def _slab(x):
        x = x.reshape(-1)                    # free reshape, native dtype
        if pad:
            x = jnp.pad(x, (0, pad))         # zeros -> contribute 0 to the sum
        return x.reshape(rows, lane_w)

    h2, o2, t2 = _slab(history), _slab(output), _slab(target)
    rate = jnp.asarray(assist_rate, jnp.float32).reshape(1)

    # --- kernel ---------------------------------------------------------------
    def kernel(rate_ref, h_ref, o_ref, t_ref, psum_ref):
        i = pl.program_id(0)
        j = pl.program_id(1)

        @pl.when(j == 0)
        def _():
            psum_ref[...] = jnp.zeros_like(psum_ref)

        rate_v = rate_ref[0]
        row0 = (i * n_inner + j) * block_rows
        if needs_mask:
            row_iota = lax.broadcasted_iota(jnp.int32, (strip, lane_w), 0)

        def body(k, acc):
            s0 = pl.multiple_of(k * strip, strip)
            h = h_ref[pl.ds(s0, strip), :].astype(jnp.float32)
            o = o_ref[pl.ds(s0, strip), :].astype(jnp.float32)
            t = t_ref[pl.ds(s0, strip), :].astype(jnp.float32)
            diff = h + rate_v * o - t
            if needs_mask:
                mask = (row0 + s0 + row_iota) < rows
                diff = jnp.where(mask, diff, 0.0)     # zero garbage tail rows
            sq = diff * diff
            # Fold strip rows into the 8-sublane accumulator (cross-vreg adds;
            # the reshape only splits the leading dim, no lane movement).
            return acc + sq.reshape(-1, _SUB, lane_w).sum(axis=0)

        acc = lax.fori_loop(0, n_strips, body,
                            jnp.zeros((_SUB, lane_w), jnp.float32),
                            unroll=min(4, n_strips))
        psum_ref[...] += acc[None]

    tile = pl.BlockSpec((block_rows, lane_w), lambda i, j: (i * n_inner + j, 0))
    out_bytes = n_outer * _SUB * lane_w * 4
    cost = pl.CostEstimate(flops=5 * total, transcendentals=0,
                           bytes_accessed=3 * total * itemsize + out_bytes)

    partials = pl.pallas_call(
        kernel,
        out_shape=jax.ShapeDtypeStruct((n_outer, _SUB, lane_w), jnp.float32),
        grid_spec=pltpu.PrefetchScalarGridSpec(
            num_scalar_prefetch=0,
            grid=(n_outer, n_inner),
            in_specs=[
                pl.BlockSpec(memory_space=pltpu.SMEM),   # assist_rate scalar
                tile,                                     # history tile
                tile,                                     # output tile
                tile,                                     # target tile
            ],
            out_specs=pl.BlockSpec((1, _SUB, lane_w), lambda i, j: (i, 0, 0)),
        ),
        compiler_params=pltpu.CompilerParams(
            dimension_semantics=("parallel", "arbitrary"),
            vmem_limit_bytes=_VMEM_LIMIT_BYTES),
        cost_estimate=cost,
    )(rate, h2, o2, t2)

    loss = jnp.sum(partials) / jnp.float32(total)
    return {"loss": loss}


if __name__ == "__main__":
    # Deterministic parameter init (nn.Parameter(torch.ones(1)))
    assist_rate = jnp.ones((1,), jnp.float32)

    # Deterministic small inputs: B=2, C=4, H=W=16 (NCHW convention)
    key = jax.random.PRNGKey(0)
    k1, k2, k3 = jax.random.split(key, 3)
    shape = (2, 4, 16, 16)
    inputs = {
        "history": jax.random.normal(k1, shape, jnp.float32),
        "output": jax.random.normal(k2, shape, jnp.float32),
        "target": jax.random.normal(k3, shape, jnp.float32),
    }

    out = line_search_forward(inputs, assist_rate)
    loss = jax.block_until_ready(out["loss"])

    # Pure-JAX reference (MSE with mean reduction)
    ref = jnp.mean(
        (inputs["history"] + assist_rate[0] * inputs["output"]
         - inputs["target"]) ** 2)
    assert jnp.allclose(loss, ref, rtol=1e-5, atol=1e-6), (loss, ref)

    print("KERNEL_OK")
</pallas_src>

<mosaic_0001>
module attributes {stable_mosaic.version = 11 : i64} {
  func.func @kernel(%arg0: i32, %arg1: i32, %arg2: memref<1xf32, #tpu.memory_space<smem>>, %arg3: memref<16x512xf32, #tpu.memory_space<vmem>>, %arg4: memref<16x512xf32, #tpu.memory_space<vmem>>, %arg5: memref<16x512xf32, #tpu.memory_space<vmem>>, %arg6: memref<1x8x512xf32, #tpu.memory_space<vmem>>) attributes {dimension_semantics = [#tpu.dimension_semantics<parallel>, #tpu.dimension_semantics<arbitrary>], iteration_bounds = array<i64: 1, 1>, scalar_prefetch = 0 : i64, scratch_operands = 0 : i64, tpu.core_type = #tpu.core_type<tc>, window_params = [{transform_indices = @transform_0, window_bounds = array<i64: 1>}, {transform_indices = @transform_1, window_bounds = array<i64: 16, 512>}, {transform_indices = @transform_2, window_bounds = array<i64: 16, 512>}, {transform_indices = @transform_3, window_bounds = array<i64: 16, 512>}, {transform_indices = @transform_4, window_bounds = array<i64: 1, 8, 512>}]} {
    %c0_i32 = arith.constant 0 : i32
    %0 = arith.cmpi eq, %arg1, %c0_i32 : i32
    %1 = arith.extui %0 : i1 to i32
    %c0_i32_0 = arith.constant 0 : i32
    %2 = arith.cmpi ne, %1, %c0_i32_0 : i32
    scf.if %2 {
      %cst_15 = arith.constant 0.000000e+00 : f32
      %36 = vector.broadcast %cst_15 : f32 to vector<1x8x512xf32>
      %c0_16 = arith.constant 0 : index
      %c0_17 = arith.constant 0 : index
      %c0_18 = arith.constant 0 : index
      %37 = vector.load %arg6[%c0_16, %c0_17, %c0_18] : memref<1x8x512xf32, #tpu.memory_space<vmem>>, vector<1x8x512xf32>
      tpu.vector_store %arg6[%c0_16, %c0_17, %c0_18], %36 {strides = array<i32>} : memref<1x8x512xf32, #tpu.memory_space<vmem>>, vector<1x8x512xf32>,
    } else {
    }
    %c0 = arith.constant 0 : index
    %3 = memref.load %arg2[%c0] : memref<1xf32, #tpu.memory_space<smem>>
    %c1_i32 = arith.constant 1 : i32
    %4 = arith.muli %arg0, %c1_i32 : i32
    %5 = arith.addi %4, %arg1 : i32
    %c16_i32 = arith.constant 16 : i32
    %6 = arith.muli %5, %c16_i32 : i32
    %7 = tpu.iota {dimensions = array<i32: 0>} : vector<16x512xi32>
    %cst = arith.constant 0.000000e+00 : f32
    %8 = vector.broadcast %cst : f32 to vector<8x512xf32>
    %c0_i32_1 = arith.constant 0 : i32
    %c16_i32_2 = arith.constant 16 : i32
    %9 = arith.muli %c0_i32_1, %c16_i32_2 : i32
    %10 = tpu.assume_multiple %9, 16 : i32
    %11 = arith.index_cast %10 : i32 to index
    %c0_3 = arith.constant 0 : index
    %12 = vector.load %arg3[%11, %c0_3] : memref<16x512xf32, #tpu.memory_space<vmem>>, vector<16x512xf32>
    %13 = arith.index_cast %10 : i32 to index
    %c0_4 = arith.constant 0 : index
    %14 = vector.load %arg4[%13, %c0_4] : memref<16x512xf32, #tpu.memory_space<vmem>>, vector<16x512xf32>
    %15 = arith.index_cast %10 : i32 to index
    %c0_5 = arith.constant 0 : index
    %16 = vector.load %arg5[%15, %c0_5] : memref<16x512xf32, #tpu.memory_space<vmem>>, vector<16x512xf32>
    %17 = vector.broadcast %3 : f32 to vector<16x512xf32>
    %18 = arith.mulf %17, %14 : vector<16x512xf32>
    %19 = arith.addf %12, %18 : vector<16x512xf32>
    %20 = arith.subf %19, %16 : vector<16x512xf32>
    %21 = arith.addi %6, %10 : i32
    %22 = vector.broadcast %21 : i32 to vector<16x512xi32>
    %23 = arith.addi %22, %7 : vector<16x512xi32>
    %c4_i32 = arith.constant 4 : i32
    %24 = vector.broadcast %c4_i32 : i32 to vector<16x512xi32>
    %25 = arith.cmpi slt, %23, %24 : vector<16x512xi32>
    %cst_6 = arith.constant 0.000000e+00 : f32
    %26 = vector.broadcast %cst_6 : f32 to vector<16x512xf32>
    %27 = arith.select %25, %20, %26 : vector<16x512xi1>, vector<16x512xf32>
    %28 = arith.mulf %27, %27 : vector<16x512xf32>
    %29 = vector.shape_cast %28 : vector<16x512xf32> to vector<2x8x512xf32>
    %cst_7 = arith.constant dense<0.000000e+00> : vector<8x512xf32>
    %30 = vector.multi_reduction <add>, %29, %cst_7 [0] : vector<2x8x512xf32> to vector<8x512xf32>
    %31 = arith.addf %8, %30 : vector<8x512xf32>
    %c1_i32_8 = arith.constant 1 : i32
    %c0_9 = arith.constant 0 : index
    %c0_10 = arith.constant 0 : index
    %c0_11 = arith.constant 0 : index
    %32 = vector.load %arg6[%c0_9, %c0_10, %c0_11] : memref<1x8x512xf32, #tpu.memory_space<vmem>>, vector<1x8x512xf32>
    %33 = vector.shape_cast %31 : vector<8x512xf32> to vector<1x8x512xf32>
    %34 = arith.addf %32, %33 : vector<1x8x512xf32>
    %c0_12 = arith.constant 0 : index
    %c0_13 = arith.constant 0 : index
    %c0_14 = arith.constant 0 : index
    %35 = vector.load %arg6[%c0_12, %c0_13, %c0_14] : memref<1x8x512xf32, #tpu.memory_space<vmem>>, vector<1x8x512xf32>
    tpu.vector_store %arg6[%c0_12, %c0_13, %c0_14], %34 {strides = array<i32>} : memref<1x8x512xf32, #tpu.memory_space<vmem>>, vector<1x8x512xf32>,
    return
  }
  func.func @transform_0(%arg0: i32, %arg1: i32) -> i32 {
    %c0_i32 = arith.constant 0 : i32
    %c0_i32_0 = arith.constant 0 : i32
    return %c0_i32 : i32
  }
  func.func @transform_1(%arg0: i32, %arg1: i32) -> (i32, i32) {
    %c1_i32 = arith.constant 1 : i32
    %0 = arith.muli %arg0, %c1_i32 : i32
    %1 = arith.addi %0, %arg1 : i32
    %c0_i32 = arith.constant 0 : i32
    %c0_i32_0 = arith.constant 0 : i32
    return %1, %c0_i32 : i32, i32
  }
  func.func @transform_2(%arg0: i32, %arg1: i32) -> (i32, i32) {
    %c1_i32 = arith.constant 1 : i32
    %0 = arith.muli %arg0, %c1_i32 : i32
    %1 = arith.addi %0, %arg1 : i32
    %c0_i32 = arith.constant 0 : i32
    %c0_i32_0 = arith.constant 0 : i32
    return %1, %c0_i32 : i32, i32
  }
  func.func @transform_3(%arg0: i32, %arg1: i32) -> (i32, i32) {
    %c1_i32 = arith.constant 1 : i32
    %0 = arith.muli %arg0, %c1_i32 : i32
    %1 = arith.addi %0, %arg1 : i32
    %c0_i32 = arith.constant 0 : i32
    %c0_i32_0 = arith.constant 0 : i32
    return %1, %c0_i32 : i32, i32
  }
  func.func @transform_4(%arg0: i32, %arg1: i32) -> (i32, i32, i32) {
    %c0_i32 = arith.constant 0 : i32
    %c0_i32_0 = arith.constant 0 : i32
    %c0_i32_1 = arith.constant 0 : i32
    return %arg0, %c0_i32, %c0_i32_0 : i32, i32, i32
  }
}

</mosaic_0001>

<bundles_post_ra>
// kernel: tpu_custom_call.1
= control target key start
LH: loop header
LB: loop body
LE: loop exit
PB: predicated region body
PF: predicated region fallthrough
CT: control target
= control target key end

     0   :  { %10 = vsyncpa [#allocation4], 0  ;;  %s449_s0 = inlined_call_operand.<no memory space> [shape: f32[1], index: 0, kind: input, shape index: {}]   ;;  %s450_s1 = inlined_call_operand.hbm [shape: f32[4,512], index: 1, kind: input, shape index: {}]   ;;  %s451_s2 = inlined_call_operand.hbm [shape: f32[4,512], index: 2, kind: input, shape index: {}]   ;;  %s452_s3 = inlined_call_operand.hbm [shape: f32[4,512], index: 3, kind: input, shape index: {}]   ;;  %s453_s4 = inlined_call_operand.hbm [shape: f32[1,8,512], index: 4, kind: output, shape index: {}]  }
   0x1   :  { %11 = vsyncpa [#allocation7], 0 }
   0x2   :  { %12 = vsyncpa [#allocation5], 0 }
   0x3   :  { %24 = vsyncadd [#allocation4], 768  ;;  %s358_s15 = smov [#allocation3]   ;;  %s264_s19 = scalar_lea.hbm %s450_s1, 256 }
   0x4   :  { %s30_s16 = sshll.u32 %s358_s15, 4  ;;  %p265_p0 = scmp.ne.s32.totalorder %s450_s1, %s264_s19  ;;  %s31_s16 = int_to_ptr.vmem [resolvable:$true] %s30_s16 }
   0x5   :  { %p268_p1 = scmp.lt.u32.totalorder %s264_s19, %s450_s1 }
   0x7   :  { %p270_p2 = pnand %p268_p1, %p265_p0 }
   0x9   :  { %273 = shalt.err (!%p270_p2)
}
   0xa   :  { %s274_s24 = scalar_lea.vmem %s31_s16, 256  ;;  %s278_s25 = scalar_lea.vmem %s31_s16, 1024 }
   0xb   :  { %p275_p3 = scmp.ne.s32.totalorder %s31_s16, %s274_s24  ;;  %p279_p4 = scmp.lt.s32.totalorder %s31_s16, %s31_s16 }
   0xc   :  { %p280_p5 = scmp.lt.s32.totalorder %s278_s25, %s274_s24 }
   0xe   :  { %p281_p6 = por %p280_p5, %p279_p4 }
  0x10   :  { %p282_p7 = pnand %p281_p6, %p275_p3 }
  0x12   :  { %285 = shalt.err (!%p282_p7)
}
  0x13   :  { %s359_s26 = smov 256   ;;  %s360_s27 = smov 16  }
  0x14   :  { %36 = dma.hbm_to_vmem [thread:$0]  %s450_s1, 256, %s31_s16, [#allocation4], %s359_s26, %s359_s26, %s360_s27  }
  0x15   :  { %46 = vsyncadd [#allocation7], 768  ;;  %s361_s30 = smov [#allocation6]   ;;  %s286_s8 = scalar_lea.hbm %s451_s2, 256 }
  0x16   :  { %s52_s5 = sshll.u32 %s361_s30, 4  ;;  %p287_p8 = scmp.ne.s32.totalorder %s451_s2, %s286_s8  ;;  %s53_s5 = int_to_ptr.vmem [resolvable:$true] %s52_s5 }
  0x17   :  { %p290_p9 = scmp.lt.u32.totalorder %s286_s8, %s451_s2 }
  0x19   :  { %p292_p10 = pnand %p290_p9, %p287_p8 }
  0x1b   :  { %295 = shalt.err (!%p292_p10)
}
  0x1c   :  { %s296_s13 = scalar_lea.vmem %s53_s5, 256  ;;  %s300_s1 = scalar_lea.vmem %s53_s5, 1024 }
  0x1d   :  { %p297_p11 = scmp.ne.s32.totalorder %s53_s5, %s296_s13  ;;  %p301_p12 = scmp.lt.s32.totalorder %s53_s5, %s53_s5 }
  0x1e   :  { %p302_p13 = scmp.lt.s32.totalorder %s300_s1, %s296_s13 }
  0x20   :  { %p303_p0 = por %p302_p13, %p301_p12 }
  0x22   :  { %p304_p1 = pnand %p303_p0, %p297_p11 }
  0x24   :  { %307 = shalt.err (!%p304_p1)
}
  0x25   :  { %58 = dma.hbm_to_vmem [thread:$0]  %s451_s2, 256, %s53_s5, [#allocation7], %s359_s26, %s359_s26, %s360_s27  }
  0x26   :  { %68 = vsyncadd [#allocation7], 768  ;;  %s362_s16 = smov [#allocation8]   ;;  %s308_s20 = scalar_lea.hbm %s452_s3, 256 }
  0x27   :  { %s74_s17 = sshll.u32 %s362_s16, 4  ;;  %p309_p2 = scmp.ne.s32.totalorder %s452_s3, %s308_s20  ;;  %s75_s17 = int_to_ptr.vmem [resolvable:$true] %s74_s17 }
  0x28   :  { %p312_p3 = scmp.lt.u32.totalorder %s308_s20, %s452_s3 }
  0x2a   :  { %p314_p4 = pnand %p312_p3, %p309_p2 }
  0x2c   :  { %317 = shalt.err (!%p314_p4)
}
  0x2d   :  { %s318_s25 = scalar_lea.vmem %s75_s17, 256  ;;  %s322_s2 = scalar_lea.vmem %s75_s17, 1024 }
  0x2e   :  { %p319_p5 = scmp.ne.s32.totalorder %s75_s17, %s318_s25  ;;  %p323_p6 = scmp.lt.s32.totalorder %s75_s17, %s75_s17 }
  0x2f   :  { %p324_p7 = scmp.lt.s32.totalorder %s322_s2, %s318_s25 }
  0x31   :  { %p325_p8 = por %p324_p7, %p323_p6 }
  0x33   :  { %p326_p9 = pnand %p325_p8, %p319_p5 }
  0x35   :  { %329 = shalt.err (!%p326_p9)
}
  0x36   :  { %80 = dma.hbm_to_vmem [thread:$0]  %s452_s3, 256, %s75_s17, [#allocation7], %s359_s26, %s359_s26, %s360_s27  }
  0x37   :  { %352 = dma.done.wait [#allocation4], 1024  }
  0x38   :  { %353 = vsyncadd [#allocation4], 4294966272 }
  0x39   :  { %354 = dma.done.wait [#allocation7], 2048  }
  0x3a   :  { %355 = vsyncadd [#allocation7], 4294965248  ;;  %v150_v0 = vstv %s449_s0  ;;  %v116_v1 = vlaneseq  ;;  %v122_v2 = vld [vmem:[#allocation3] sm:$0xff]  ;;  %v124_v4 = vld [vmem:[#allocation3 + $0x10] sm:$0xff]  ;;  %s363_s0 = smov [#allocation9]  }
  0x3b   :  { %v132_v3 = vld [vmem:[#allocation6] sm:$0xff]  ;;  %v134_v5 = vld [vmem:[#allocation6 + $0x10] sm:$0xff]  ;;  %v123_v9 = vld [vmem:[#allocation3 + $0x8] sm:$0xff]  ;;  %s247_s3 = sshll.u32 %s363_s0, 4  ;;  %s248_s3 = int_to_ptr.vmem [resolvable:$true] %s247_s3 }
  0x3c   :  { %v151_v6 = vmul.f32 %v150_v0, %v132_v3  ;;  %v142_v7 = vld [vmem:[#allocation8] sm:$0xff]  ;;  %v153_v8 = vmul.f32 %v150_v0, %v134_v5  ;;  %v133_v10 = vld [vmem:[#allocation6 + $0x8] sm:$0xff]  ;;  %v117_v11 = vshrl.u32 %v116_v1, 7  ;;  %v144_v12 = vld [vmem:[#allocation8 + $0x10] sm:$0xff]  ;;  %s330_s26 = scalar_lea.vmem %s248_s3, 512  ;;  %p335_p11 = scmp.lt.s32.totalorder %s248_s3, %s248_s3 }
  0x3d   :  { %v125_v14 = vld [vmem:[#allocation3 + $0x18] sm:$0xff]  ;;  %v152_v16 = vmul.f32 %v150_v0, %v133_v10  ;;  %v143_v18 = vld [vmem:[#allocation8 + $0x8] sm:$0xff]  ;;  %p331_p10 = scmp.ne.s32.totalorder %s248_s3, %s330_s26  ;;  %p336_p12 = scmp.lt.s32.totalorder %s330_s26, %s330_s26 }
  0x3e   :  { %v159_v13 = vadd.f32 %v151_v6, %v122_v2  ;;  %v135_v15 = vld [vmem:[#allocation6 + $0x18] sm:$0xff]  ;;  %v161_v17 = vadd.f32 %v153_v8, %v124_v4  ;;  %vm179_vm0 = vcmp.lt.s32.totalorder %v117_v11, 4 }
  0x3f   :  { %v154_v19 = vmul.f32 %v150_v0, %v135_v15  ;;  %v145_v21 = vld [vmem:[#allocation8 + $0x18] sm:$0xff]  ;;  %v160_v22 = vadd.f32 %v152_v16, %v123_v9  ;;  %p337_p13 = por %p336_p12, %p335_p11 }
  0x40   :  { %v167_v20 = vsub.f32 %v159_v13, %v142_v7  ;;  %v169_v23 = vsub.f32 %v161_v17, %v144_v12 }
  0x41   :  { %v162_v24 = vadd.f32 %v154_v19, %v125_v14  ;;  %v168_v25 = vsub.f32 %v160_v22, %v143_v18  ;;  %p338_p0 = pnand %p337_p13, %p331_p10 }
  0x42   :  { %v189_v26 = vcombine.low %v167_v20, %v169_v23  ;;  %v190_v27 = vcombine.high %v167_v20, %v169_v23 }
  0x43   :  { %v170_v28 = vsub.f32 %v162_v24, %v145_v21 }
  0x44   :  { %v205_v29 = vsel %vm179_vm0, %v189_v26, 0.0  ;;  %v206_v30 = vsel %vm179_vm0, %v190_v27, 0.0 }
  0x45   :  { %v191_v31 = vcombine.low %v168_v25, %v170_v28  ;;  %v192_v32 = vcombine.high %v168_v25, %v170_v28  ;;  %v213_v33 = vmul.f32 %v205_v29, %v205_v29  ;;  %v214_v34 = vmul.f32 %v206_v30, %v206_v30 }
  0x47   :  { %v207_v35 = vsel %vm179_vm0, %v191_v31, 0.0  ;;  %v208_v36 = vsel %vm179_vm0, %v192_v32, 0.0  ;;  %237 = vst [vmem:[#allocation9] sm:$0xff] %v213_v33  ;;  %238 = vst [vmem:[#allocation9 + $0x8] sm:$0xff] %v214_v34 }
  0x48   :  { %v215_v37 = vmul.f32 %v207_v35, %v207_v35  ;;  %v216_v38 = vmul.f32 %v208_v36, %v208_v36 }
  0x4a   :  { %239 = vst [vmem:[#allocation9 + $0x10] sm:$0xff] %v215_v37  ;;  %240 = vst [vmem:[#allocation9 + $0x18] sm:$0xff] %v216_v38 }
  0x4b   :  { %341 = shalt.err (!%p338_p0)
}
  0x4c   :  { %s342_s7 = scalar_lea.hbm %s453_s4, 512 }
  0x4d   :  { %p343_p1 = scmp.ne.s32.totalorder %s453_s4, %s342_s7  ;;  %p346_p2 = scmp.lt.u32.totalorder %s342_s7, %s453_s4 }
  0x4f   :  { %p348_p3 = pnand %p346_p2, %p343_p1 }
  0x51   :  { %351 = shalt.err (!%p348_p3)
}
  0x52   :  { %250 = dma.vmem_to_hbm [thread:$0]  %s248_s3, 512, %s453_s4, [#allocation5]  }
  0x53   :  { %356 = dma.done.wait [#allocation5], 512  }
  0x54   :  { %357 = vsyncadd [#allocation5], 4294966784 }
  0x55   :  { %254 = vsyncpa [#allocation4], 1 }
  0x56   :  { %255 = vsyncpa [#allocation7], 1 }
  0x57   :  { %256 = vsyncpa [#allocation5], 1 }

</bundles_post_ra>
